<compile_context>
chip_gen: v7x
topology: tpu7x:2x2x1
jax: 0.10.0
libtpu: 0.0.40
codegen_flags: <defaults>
</compile_context>

<pallas_src>
import functools

import numpy as np

import jax
import jax.numpy as jnp
from jax.experimental import pallas as pl
from jax.experimental.pallas import tpu as pltpu


# --------------------------------------------------------------------------- #
# Pallas kernel.  Grid = (batch, HWl tile).
# --------------------------------------------------------------------------- #
def _lraspp_kernel(high_ref, low_ref,
                   w_cbr_ref, b_cbr_ref, w_scale_ref,
                   w_hc_ref, w_lc_ref, bias_ref,
                   interp_ref,
                   out_ref,
                   hi_scratch):
    j = pl.program_id(1)

    # Per-batch work: done once (j == 0), result cached in VMEM scratch.
    @pl.when(j == 0)
    def _():
        high = high_ref[...]                                     # (Ch, HWh)

        # cbr branch: BN-folded 1x1 conv -> ReLU   (Dropout = identity in eval)
        feat = jnp.dot(w_cbr_ref[...], high,
                       preferred_element_type=jnp.float32)       # (IC, HWh) f32 acc
        feat = jnp.maximum(feat + b_cbr_ref[...], 0.0)

        # scale branch (pool-first, PyTorch order):
        # global avg pool (XLU lane reduce) -> tiny 1x1 matvec -> sigmoid
        pooled = jnp.mean(high.astype(jnp.float32), axis=-1,
                          keepdims=True)                         # (Ch, 1)
        gate = jax.nn.sigmoid(
            jnp.dot(w_scale_ref[...].astype(jnp.float32), pooled,
                    preferred_element_type=jnp.float32))         # (IC, 1)
        feat = feat * gate                                       # (IC, HWh)

        # high classifier applied at HIGH resolution (reassociated with the
        # upsample so only NC channels are ever interpolated).
        w_hc = w_hc_ref[...]
        hi = jnp.dot(w_hc, feat.astype(w_hc.dtype),
                     preferred_element_type=jnp.float32)         # (NC, HWh)
        hi_scratch[...] = hi.astype(hi_scratch.dtype)

    # Per-HWl-tile work: bilinear upsample of the NC hi-res logit maps (single
    # matmul against a column slice of kron(R_h,R_w).T) + low classifier + bias.
    up = jnp.dot(hi_scratch[...], interp_ref[...],
                 preferred_element_type=jnp.float32)             # (NC, TL)
    lo = jnp.dot(w_lc_ref[...], low_ref[...],
                 preferred_element_type=jnp.float32)             # (NC, TL)
    out_ref[...] = (up + lo + bias_ref[...]).astype(out_ref.dtype)


# --------------------------------------------------------------------------- #
# Host-side helpers.
# --------------------------------------------------------------------------- #
@functools.lru_cache(maxsize=None)
def _interp_matrix_np(in_h, in_w, out_h, out_w):
    """Cached (HWh, HWl) bilinear (align_corners=False) operator, built on host."""
    def mat(n_in, n_out):
        scale = n_in / n_out
        dst = np.arange(n_out, dtype=np.float64)
        src = np.maximum(scale * (dst + 0.5) - 0.5, 0.0)
        i0 = np.floor(src).astype(np.int64)
        i1 = np.minimum(i0 + 1, n_in - 1)
        w1 = src - i0
        m = np.zeros((n_out, n_in), np.float64)
        rows = np.arange(n_out)
        np.add.at(m, (rows, i0), 1.0 - w1)
        np.add.at(m, (rows, i1), w1)
        return m
    r_h = mat(in_h, out_h)                                       # (Hl, Hh)
    r_w = mat(in_w, out_w)                                       # (Wl, Wh)
    return np.kron(r_h, r_w).T.astype(np.float32)                # (HWh, HWl)


def _pick_tile(hwl, max_tile=2048):
    """Pad HWl to a multiple of 128 and pick the largest 128-multiple divisor tile."""
    hwl_pad = ((hwl + 127) // 128) * 128
    n128 = hwl_pad // 128
    best = 1
    for d in range(1, n128 + 1):
        if n128 % d == 0 and d * 128 <= max_tile:
            best = d
    return hwl_pad, best * 128


# --------------------------------------------------------------------------- #
# Wrapper
# --------------------------------------------------------------------------- #
def lraspp_head(low, high,
                w_cbr, bn_gamma, bn_beta, bn_mean, bn_var,
                w_scale, w_low, b_low, w_high, b_high,
                eps=1e-5, compute_dtype=jnp.bfloat16, max_tile=2048):
    """low: (N, Cl, Hl, Wl); high: (N, Ch, Hh, Wh); 1x1 conv weights as (out, in)."""
    N, Cl, Hl, Wl = low.shape
    _, Ch, Hh, Wh = high.shape
    IC = w_cbr.shape[0]
    NC = w_low.shape[0]
    HWl = Hl * Wl
    HWh = Hh * Wh
    out_dtype = low.dtype

    HWl_pad, TL = _pick_tile(HWl, max_tile)
    n_tiles = HWl_pad // TL

    # Free reshapes (no transpose): channels on sublanes, spatial on lanes.
    high2 = high.reshape(N, Ch, HWh).astype(compute_dtype)
    low2 = low.reshape(N, Cl, HWl)
    if HWl_pad != HWl:
        low2 = jnp.pad(low2, ((0, 0), (0, 0), (0, HWl_pad - HWl)))
    low2 = low2.astype(compute_dtype)

    # Fold eval-mode BatchNorm into the cbr 1x1 conv (bias stays f32).
    inv_std = 1.0 / jnp.sqrt(bn_var + eps)
    s = bn_gamma * inv_std
    w_cbr_f = (w_cbr * s[:, None]).astype(compute_dtype)              # (IC, Ch)
    b_cbr_f = (bn_beta - bn_mean * s)[:, None].astype(jnp.float32)    # (IC, 1)

    # Bilinear (align_corners=False) upsample operator, host-built & cached.
    interp_np = _interp_matrix_np(Hh, Wh, Hl, Wl)                     # (HWh, HWl)
    if HWl_pad != HWl:
        interp_np = np.pad(interp_np, ((0, 0), (0, HWl_pad - HWl)))
    interp = jnp.asarray(interp_np, dtype=compute_dtype)              # (HWh, HWl_pad)

    w_scale_c = w_scale.astype(compute_dtype)                         # (IC, Ch)
    w_hc_c = w_high.astype(compute_dtype)                             # (NC, IC)
    w_lc_c = w_low.astype(compute_dtype)                              # (NC, Cl)
    bias = (b_high + b_low)[:, None].astype(jnp.float32)              # (NC, 1), fused

    out = pl.pallas_call(
        _lraspp_kernel,
        out_shape=jax.ShapeDtypeStruct((N, NC, HWl_pad), out_dtype),
        grid_spec=pltpu.PrefetchScalarGridSpec(
            num_scalar_prefetch=0,
            grid=(N, n_tiles),
            in_specs=[
                pl.BlockSpec((None, Ch, HWh), lambda n, j: (n, 0, 0)),   # high (per batch)
                pl.BlockSpec((None, Cl, TL), lambda n, j: (n, 0, j)),    # low tile
                pl.BlockSpec((IC, Ch), lambda n, j: (0, 0)),             # w_cbr (BN folded)
                pl.BlockSpec((IC, 1), lambda n, j: (0, 0)),              # b_cbr (BN folded)
                pl.BlockSpec((IC, Ch), lambda n, j: (0, 0)),             # w_scale
                pl.BlockSpec((NC, IC), lambda n, j: (0, 0)),             # w_high_classifier
                pl.BlockSpec((NC, Cl), lambda n, j: (0, 0)),             # w_low_classifier
                pl.BlockSpec((NC, 1), lambda n, j: (0, 0)),              # fused bias
                pl.BlockSpec((HWh, TL), lambda n, j: (0, j)),            # interp column slice
            ],
            out_specs=pl.BlockSpec((None, NC, TL), lambda n, j: (n, 0, j)),
            scratch_shapes=[pltpu.VMEM((NC, HWh), compute_dtype)],       # hi-res logits
        ),
        compiler_params=pltpu.CompilerParams(
            dimension_semantics=("parallel", "arbitrary"),
            vmem_limit_bytes=48 * 1024 * 1024,   # safe on v7x's 64 MiB; ample on v5e/v6e
        ),
    )(high2, low2, w_cbr_f, b_cbr_f, w_scale_c, w_hc_c, w_lc_c, bias, interp)

    if HWl_pad != HWl:
        out = out[:, :, :HWl]
    # (N, NC, HWl) -> (N, NC, Hl, Wl): free reshape, no transpose.
    return out.reshape(N, NC, Hl, Wl)


# --------------------------------------------------------------------------- #
# Pure-JAX reference mirroring the PyTorch forward (eval mode), NCHW.
# --------------------------------------------------------------------------- #
def _bilinear_resize_ref(x, out_h, out_w):
    """PyTorch F.interpolate(mode='bilinear', align_corners=False) on NCHW."""
    _, _, in_h, in_w = x.shape

    def coords(in_size, out_size):
        scale = in_size / out_size
        dst = jnp.arange(out_size, dtype=jnp.float32)
        src = jnp.maximum(scale * (dst + 0.5) - 0.5, 0.0)
        i0 = jnp.floor(src).astype(jnp.int32)
        i1 = jnp.minimum(i0 + 1, in_size - 1)
        w1 = src - i0.astype(jnp.float32)
        return i0, i1, 1.0 - w1, w1

    h0, h1, wh0, wh1 = coords(in_h, out_h)
    c0, c1, wc0, wc1 = coords(in_w, out_w)
    xh = x[:, :, h0, :] * wh0[None, None, :, None] + x[:, :, h1, :] * wh1[None, None, :, None]
    return xh[:, :, :, c0] * wc0[None, None, None, :] + xh[:, :, :, c1] * wc1[None, None, None, :]


def lraspp_head_reference(low, high,
                          w_cbr, bn_gamma, bn_beta, bn_mean, bn_var,
                          w_scale, w_low, b_low, w_high, b_high,
                          eps=1e-5):
    feat = jnp.einsum('oc,nchw->nohw', w_cbr, high)
    inv_std = 1.0 / jnp.sqrt(bn_var + eps)
    feat = (feat - bn_mean[None, :, None, None]) * inv_std[None, :, None, None]
    feat = feat * bn_gamma[None, :, None, None] + bn_beta[None, :, None, None]
    feat = jnp.maximum(feat, 0.0)                                  # ReLU (Dropout: identity)

    pooled = jnp.mean(high, axis=(2, 3))                           # (N, Ch)
    gate = jax.nn.sigmoid(pooled @ w_scale.T)                      # (N, IC)
    feat = feat * gate[:, :, None, None]

    up = _bilinear_resize_ref(feat, low.shape[2], low.shape[3])

    high_logits = jnp.einsum('oc,nchw->nohw', w_high, up) + b_high[None, :, None, None]
    low_logits = jnp.einsum('oc,nchw->nohw', w_low, low) + b_low[None, :, None, None]
    return high_logits + low_logits


if __name__ == "__main__":
    # Make the f32 reference einsums (and f32 in-kernel dots) exact.
    jax.config.update("jax_default_matmul_precision", "highest")

    # Small shapes consistent with LRASPPHead(low_channels=8, high_channels=16,
    # num_classes=4, inter_channels=32); high is the lower-resolution feature map.
    N = 2
    low_channels, high_channels = 8, 16
    num_classes, inter_channels = 4, 32
    Hl, Wl = 16, 16
    Hh, Wh = 8, 8

    key = jax.random.PRNGKey(0)
    ks = jax.random.split(key, 12)

    low = jax.random.normal(ks[0], (N, low_channels, Hl, Wl), dtype=jnp.float32)
    high = jax.random.normal(ks[1], (N, high_channels, Hh, Wh), dtype=jnp.float32)

    w_cbr = 0.1 * jax.random.normal(ks[2], (inter_channels, high_channels), jnp.float32)
    bn_gamma = 1.0 + 0.1 * jax.random.normal(ks[3], (inter_channels,), jnp.float32)
    bn_beta = 0.1 * jax.random.normal(ks[4], (inter_channels,), jnp.float32)
    bn_mean = 0.1 * jax.random.normal(ks[5], (inter_channels,), jnp.float32)
    bn_var = jnp.abs(1.0 + 0.1 * jax.random.normal(ks[6], (inter_channels,), jnp.float32))
    w_scale = 0.1 * jax.random.normal(ks[7], (inter_channels, high_channels), jnp.float32)
    w_low = 0.1 * jax.random.normal(ks[8], (num_classes, low_channels), jnp.float32)
    b_low = 0.1 * jax.random.normal(ks[9], (num_classes,), jnp.float32)
    w_high = 0.1 * jax.random.normal(ks[10], (num_classes, inter_channels), jnp.float32)
    b_high = 0.1 * jax.random.normal(ks[11], (num_classes,), jnp.float32)

    args = (low, high, w_cbr, bn_gamma, bn_beta, bn_mean, bn_var,
            w_scale, w_low, b_low, w_high, b_high)

    ref = lraspp_head_reference(*args)

    # Exact-math check: f32 MXU operands.
    out_f32 = jax.block_until_ready(lraspp_head(*args, compute_dtype=jnp.float32))
    assert out_f32.shape == (N, num_classes, Hl, Wl)
    err_f32 = jnp.max(jnp.abs(out_f32 - ref))
    assert jnp.allclose(out_f32, ref, atol=1e-3, rtol=1e-3), f"f32 mismatch: {err_f32}"

    # Fast path: bf16 MXU operands with f32 accumulation (looser tolerance).
    out_bf16 = jax.block_until_ready(lraspp_head(*args, compute_dtype=jnp.bfloat16))
    assert out_bf16.shape == (N, num_classes, Hl, Wl)
    err_bf16 = jnp.max(jnp.abs(out_bf16 - ref))
    assert jnp.allclose(out_bf16, ref, atol=2e-2, rtol=2e-2), f"bf16 mismatch: {err_bf16}"

    print("KERNEL_OK")
</pallas_src>

<mosaic_0001>
module attributes {stable_mosaic.version = 11 : i64} {
  func.func @_lraspp_kernel(%arg0: i32, %arg1: i32, %arg2: memref<1x16x64xf32, #tpu.memory_space<vmem>>, %arg3: memref<1x8x256xf32, #tpu.memory_space<vmem>>, %arg4: memref<32x16xf32, #tpu.memory_space<vmem>>, %arg5: memref<32x1xf32, #tpu.memory_space<vmem>>, %arg6: memref<32x16xf32, #tpu.memory_space<vmem>>, %arg7: memref<4x32xf32, #tpu.memory_space<vmem>>, %arg8: memref<4x8xf32, #tpu.memory_space<vmem>>, %arg9: memref<4x1xf32, #tpu.memory_space<vmem>>, %arg10: memref<64x256xf32, #tpu.memory_space<vmem>>, %arg11: memref<1x4x256xf32, #tpu.memory_space<vmem>>, %arg12: memref<4x64xf32, #tpu.memory_space<vmem>>) attributes {dimension_semantics = [#tpu.dimension_semantics<parallel>, #tpu.dimension_semantics<arbitrary>], iteration_bounds = array<i64: 2, 1>, scalar_prefetch = 0 : i64, scratch_operands = 1 : i64, tpu.core_type = #tpu.core_type<tc>, window_params = [{transform_indices = @transform_0, window_bounds = array<i64: 1, 16, 64>}, {transform_indices = @transform_1, window_bounds = array<i64: 1, 8, 256>}, {pipeline_mode = #tpu.pipeline_mode<synchronous>, transform_indices = @transform_2, window_bounds = array<i64: 32, 16>}, {pipeline_mode = #tpu.pipeline_mode<synchronous>, transform_indices = @transform_3, window_bounds = array<i64: 32, 1>}, {pipeline_mode = #tpu.pipeline_mode<synchronous>, transform_indices = @transform_4, window_bounds = array<i64: 32, 16>}, {pipeline_mode = #tpu.pipeline_mode<synchronous>, transform_indices = @transform_5, window_bounds = array<i64: 4, 32>}, {pipeline_mode = #tpu.pipeline_mode<synchronous>, transform_indices = @transform_6, window_bounds = array<i64: 4, 8>}, {pipeline_mode = #tpu.pipeline_mode<synchronous>, transform_indices = @transform_7, window_bounds = array<i64: 4, 1>}, {transform_indices = @transform_8, window_bounds = array<i64: 64, 256>}, {transform_indices = @transform_9, window_bounds = array<i64: 1, 4, 256>}]} {
    %c0_i32 = arith.constant 0 : i32
    %0 = arith.cmpi eq, %arg1, %c0_i32 : i32
    %1 = arith.extui %0 : i1 to i32
    %c0_i32_0 = arith.constant 0 : i32
    %2 = arith.cmpi ne, %1, %c0_i32_0 : i32
    scf.if %2 {
      %c0_15 = arith.constant 0 : index
      %c0_16 = arith.constant 0 : index
      %c0_17 = arith.constant 0 : index
      %17 = vector.load %arg2[%c0_15, %c0_16, %c0_17] : memref<1x16x64xf32, #tpu.memory_space<vmem>>, vector<1x16x64xf32>
      %18 = vector.shape_cast %17 : vector<1x16x64xf32> to vector<16x64xf32>
      %c0_18 = arith.constant 0 : index
      %c0_19 = arith.constant 0 : index
      %19 = vector.load %arg4[%c0_18, %c0_19] : memref<32x16xf32, #tpu.memory_space<vmem>>, vector<32x16xf32>
      %cst_20 = arith.constant dense<0.000000e+00> : vector<32x64xf32>
      %20 = tpu.matmul %19, %18, %cst_20 {dimension_numbers = #tpu.dot_dimension_numbers<[1], [0], [0], [1], [0, 0, 1, 1], [], []>, precision = #tpu.contract_precision<fp32>} : vector<32x16xf32>, vector<16x64xf32>, vector<32x64xf32> -> vector<32x64xf32>
      %c0_21 = arith.constant 0 : index
      %c0_22 = arith.constant 0 : index
      %21 = vector.load %arg5[%c0_21, %c0_22] : memref<32x1xf32, #tpu.memory_space<vmem>>, vector<32x1xf32>
      %22 = vector.broadcast %21 : vector<32x1xf32> to vector<32x64xf32>
      %23 = arith.addf %20, %22 : vector<32x64xf32>
      %cst_23 = arith.constant 0.000000e+00 : f32
      %24 = vector.broadcast %cst_23 : f32 to vector<32x64xf32>
      %25 = arith.maximumf %23, %24 : vector<32x64xf32>
      %cst_24 = arith.constant dense<0.000000e+00> : vector<16xf32>
      %26 = vector.multi_reduction <add>, %18, %cst_24 [1] : vector<16x64xf32> to vector<16xf32>
      %27 = vector.shape_cast %26 : vector<16xf32> to vector<16x1xf32>
      %cst_25 = arith.constant 6.400000e+01 : f32
      %28 = vector.broadcast %cst_25 : f32 to vector<16x1xf32>
      %29 = arith.divf %27, %28 : vector<16x1xf32>
      %c0_26 = arith.constant 0 : index
      %c0_27 = arith.constant 0 : index
      %30 = vector.load %arg6[%c0_26, %c0_27] : memref<32x16xf32, #tpu.memory_space<vmem>>, vector<32x16xf32>
      %cst_28 = arith.constant dense<0.000000e+00> : vector<32x1xf32>
      %31 = tpu.matmul %30, %29, %cst_28 {dimension_numbers = #tpu.dot_dimension_numbers<[1], [0], [0], [1], [0, 0, 1, 1], [], []>, precision = #tpu.contract_precision<fp32>} : vector<32x16xf32>, vector<16x1xf32>, vector<32x1xf32> -> vector<32x1xf32>
      %32 = arith.negf %31 : vector<32x1xf32>
      %33 = math.exp %32 : vector<32x1xf32>
      %cst_29 = arith.constant 1.000000e+00 : f32
      %34 = vector.broadcast %cst_29 : f32 to vector<32x1xf32>
      %35 = arith.addf %34, %33 : vector<32x1xf32>
      %36 = arith.divf %34, %35 : vector<32x1xf32>
      %37 = vector.broadcast %36 : vector<32x1xf32> to vector<32x64xf32>
      %38 = arith.mulf %25, %37 : vector<32x64xf32>
      %c0_30 = arith.constant 0 : index
      %c0_31 = arith.constant 0 : index
      %39 = vector.load %arg7[%c0_30, %c0_31] : memref<4x32xf32, #tpu.memory_space<vmem>>, vector<4x32xf32>
      %cst_32 = arith.constant dense<0.000000e+00> : vector<4x64xf32>
      %40 = tpu.matmul %39, %38, %cst_32 {dimension_numbers = #tpu.dot_dimension_numbers<[1], [0], [0], [1], [0, 0, 1, 1], [], []>, precision = #tpu.contract_precision<fp32>} : vector<4x32xf32>, vector<32x64xf32>, vector<4x64xf32> -> vector<4x64xf32>
      %c0_33 = arith.constant 0 : index
      %c0_34 = arith.constant 0 : index
      %41 = vector.load %arg12[%c0_33, %c0_34] : memref<4x64xf32, #tpu.memory_space<vmem>>, vector<4x64xf32>
      tpu.vector_store %arg12[%c0_33, %c0_34], %40 {strides = array<i32>} : memref<4x64xf32, #tpu.memory_space<vmem>>, vector<4x64xf32>,
    } else {
    }
    %c0 = arith.constant 0 : index
    %c0_1 = arith.constant 0 : index
    %3 = vector.load %arg12[%c0, %c0_1] : memref<4x64xf32, #tpu.memory_space<vmem>>, vector<4x64xf32>
    %c0_2 = arith.constant 0 : index
    %c0_3 = arith.constant 0 : index
    %4 = vector.load %arg10[%c0_2, %c0_3] : memref<64x256xf32, #tpu.memory_space<vmem>>, vector<64x256xf32>
    %cst = arith.constant dense<0.000000e+00> : vector<4x256xf32>
    %5 = tpu.matmul %3, %4, %cst {dimension_numbers = #tpu.dot_dimension_numbers<[1], [0], [0], [1], [0, 0, 1, 1], [], []>, precision = #tpu.contract_precision<fp32>} : vector<4x64xf32>, vector<64x256xf32>, vector<4x256xf32> -> vector<4x256xf32>
    %c0_4 = arith.constant 0 : index
    %c0_5 = arith.constant 0 : index
    %6 = vector.load %arg8[%c0_4, %c0_5] : memref<4x8xf32, #tpu.memory_space<vmem>>, vector<4x8xf32>
    %c0_6 = arith.constant 0 : index
    %c0_7 = arith.constant 0 : index
    %c0_8 = arith.constant 0 : index
    %7 = vector.load %arg3[%c0_6, %c0_7, %c0_8] : memref<1x8x256xf32, #tpu.memory_space<vmem>>, vector<1x8x256xf32>
    %8 = vector.shape_cast %7 : vector<1x8x256xf32> to vector<8x256xf32>
    %cst_9 = arith.constant dense<0.000000e+00> : vector<4x256xf32>
    %9 = tpu.matmul %6, %8, %cst_9 {dimension_numbers = #tpu.dot_dimension_numbers<[1], [0], [0], [1], [0, 0, 1, 1], [], []>, precision = #tpu.contract_precision<fp32>} : vector<4x8xf32>, vector<8x256xf32>, vector<4x256xf32> -> vector<4x256xf32>
    %10 = arith.addf %5, %9 : vector<4x256xf32>
    %c0_10 = arith.constant 0 : index
    %c0_11 = arith.constant 0 : index
    %11 = vector.load %arg9[%c0_10, %c0_11] : memref<4x1xf32, #tpu.memory_space<vmem>>, vector<4x1xf32>
    %12 = vector.broadcast %11 : vector<4x1xf32> to vector<4x256xf32>
    %13 = arith.addf %10, %12 : vector<4x256xf32>
    %c0_12 = arith.constant 0 : index
    %c0_13 = arith.constant 0 : index
    %c0_14 = arith.constant 0 : index
    %14 = vector.load %arg11[%c0_12, %c0_13, %c0_14] : memref<1x4x256xf32, #tpu.memory_space<vmem>>, vector<1x4x256xf32>
    %15 = vector.shape_cast %14 : vector<1x4x256xf32> to vector<4x256xf32>
    %16 = vector.shape_cast %13 : vector<4x256xf32> to vector<1x4x256xf32>
    tpu.vector_store %arg11[%c0_12, %c0_13, %c0_14], %16 {strides = array<i32>} : memref<1x4x256xf32, #tpu.memory_space<vmem>>, vector<1x4x256xf32>,
    return
  }
  func.func @transform_0(%arg0: i32, %arg1: i32) -> (i32, i32, i32) {
    %c0_i32 = arith.constant 0 : i32
    %c0_i32_0 = arith.constant 0 : i32
    %c0_i32_1 = arith.constant 0 : i32
    return %arg0, %c0_i32, %c0_i32_0 : i32, i32, i32
  }
  func.func @transform_1(%arg0: i32, %arg1: i32) -> (i32, i32, i32) {
    %c0_i32 = arith.constant 0 : i32
    %c0_i32_0 = arith.constant 0 : i32
    return %arg0, %c0_i32, %arg1 : i32, i32, i32
  }
  func.func @transform_2(%arg0: i32, %arg1: i32) -> (i32, i32) {
    %c0_i32 = arith.constant 0 : i32
    %c0_i32_0 = arith.constant 0 : i32
    %c0_i32_1 = arith.constant 0 : i32
    return %c0_i32, %c0_i32_0 : i32, i32
  }
  func.func @transform_3(%arg0: i32, %arg1: i32) -> (i32, i32) {
    %c0_i32 = arith.constant 0 : i32
    %c0_i32_0 = arith.constant 0 : i32
    %c0_i32_1 = arith.constant 0 : i32
    return %c0_i32, %c0_i32_0 : i32, i32
  }
  func.func @transform_4(%arg0: i32, %arg1: i32) -> (i32, i32) {
    %c0_i32 = arith.constant 0 : i32
    %c0_i32_0 = arith.constant 0 : i32
    %c0_i32_1 = arith.constant 0 : i32
    return %c0_i32, %c0_i32_0 : i32, i32
  }
  func.func @transform_5(%arg0: i32, %arg1: i32) -> (i32, i32) {
    %c0_i32 = arith.constant 0 : i32
    %c0_i32_0 = arith.constant 0 : i32
    %c0_i32_1 = arith.constant 0 : i32
    return %c0_i32, %c0_i32_0 : i32, i32
  }
  func.func @transform_6(%arg0: i32, %arg1: i32) -> (i32, i32) {
    %c0_i32 = arith.constant 0 : i32
    %c0_i32_0 = arith.constant 0 : i32
    %c0_i32_1 = arith.constant 0 : i32
    return %c0_i32, %c0_i32_0 : i32, i32
  }
  func.func @transform_7(%arg0: i32, %arg1: i32) -> (i32, i32) {
    %c0_i32 = arith.constant 0 : i32
    %c0_i32_0 = arith.constant 0 : i32
    %c0_i32_1 = arith.constant 0 : i32
    return %c0_i32, %c0_i32_0 : i32, i32
  }
  func.func @transform_8(%arg0: i32, %arg1: i32) -> (i32, i32) {
    %c0_i32 = arith.constant 0 : i32
    %c0_i32_0 = arith.constant 0 : i32
    return %c0_i32, %arg1 : i32, i32
  }
  func.func @transform_9(%arg0: i32, %arg1: i32) -> (i32, i32, i32) {
    %c0_i32 = arith.constant 0 : i32
    %c0_i32_0 = arith.constant 0 : i32
    return %arg0, %c0_i32, %arg1 : i32, i32, i32
  }
}

</mosaic_0001>

<bundles_post_ra>
// kernel: tpu_custom_call.1
= control target key start
LH: loop header
LB: loop body
LE: loop exit
PB: predicated region body
PF: predicated region fallthrough
CT: control target
= control target key end

     0   :  { %s4960_s0 = inlined_call_operand.vmem [shape: f32[2,16,64], index: 0, kind: input, shape index: {}]   ;;  %s4961_s1 = inlined_call_operand.hbm [shape: f32[2,8,256], index: 1, kind: input, shape index: {}]   ;;  %s4962_s2 = inlined_call_operand.vmem [shape: f32[32,16], index: 2, kind: input, shape index: {}]   ;;  %s4963_s3 = inlined_call_operand.vmem [shape: f32[32,1], index: 3, kind: input, shape index: {}]   ;;  %s4964_s4 = inlined_call_operand.vmem [shape: f32[32,16], index: 4, kind: input, shape index: {}]   ;;  %s4965_s5 = inlined_call_operand.vmem [shape: f32[4,32], index: 5, kind: input, shape index: {}]   ;;  %s4966_s6 = inlined_call_operand.hbm [shape: f32[4,8], index: 6, kind: input, shape index: {}]   ;;  %s4967_s7 = inlined_call_operand.vmem [shape: f32[4,1], index: 7, kind: input, shape index: {}]   ;;  %s4968_s8 = inlined_call_operand.vmem [shape: f32[64,256], index: 8, kind: input, shape index: {}]   ;;  %s4969_s9 = inlined_call_operand.hbm [shape: f32[2,4,256], index: 9, kind: output, shape index: {}]  }
   0x1   :  { %4976 = sst [smem:[#allocation14_spill]] %s4966_s6 }
   0x2   :  { %14 = vsyncpa [#allocation4], 0 }
   0x3   :  { %16 = vsyncpa [#allocation4 + $0x1], 0 }
   0x4   :  { %17 = vsyncpa [#allocation7], 0 }
   0x5   :  { %18 = vsyncpa [#allocation5], 0 }
   0x6   :  { %20 = vsyncpa [#allocation5 + $0x1], 0  ;;  %s4377_s30 = smov 0   ;;  %s4379_s10 = smov 0  }
   0x7   :  { %s4381_s11 = smov 0   ;;  %s4383_s12 = smov 0  }
   0x8   :  { %s4385_s13 = smov 0   ;;  %s4387_s14 = smov 0  }
   0x9 LB: > { %4977 = sst [smem:[#allocation12_spill]] %s4298_s30  ;;  %s3508_s15 = sadd.s32 4294967295, %s4318_s14   ;;  %s4318_s14 = sphi %s4387_s14, %s26_s14   ;;  %s4314_s13 = sphi %s4385_s13, %s5003_s13   ;;  %s4310_s12 = sphi %s4383_s12, %s5002_s12   ;;  %s4306_s11 = sphi %s4381_s11, %s5001_s11   ;;  %s4302_s10 = sphi %s4379_s10, %s5000_s10   ;;  %s4298_s30 = sphi %s4377_s30, %s4999_s30  }
   0xa   : > { %s3509_s16 = sadd.s32 4294967294, %s4318_s14   ;;  %p86_p0 = scmp.ne.s32.totalorder %s4302_s10, %s4298_s30 }
   0xb   : > { %p4411_p1 = scmp.eq.s32.totalorder %s3508_s15, 0  ;;  %p4415_p2 = scmp.eq.s32.totalorder %s3508_s15, 1 }
   0xc   : > { %p270_p3 = scmp.eq.s32.totalorder %s3509_s16, 1  ;;  %p3510_p5 = scmp.ge.s32.totalorder %s4318_s14, 1 }
   0xd   : > { %s4978_s17 = scalar_select %p4411_p1, 1, 0 }
   0xe   : > { %s4979_s18 = scalar_select %p4415_p2, 1, 0 }
   0xf   : > { %p4421_p4 = por %p4411_p1, %p86_p0  ;;  %p4426_p6 = por %p270_p3, %p86_p0 }
  0x10   : > { %p277_p7 = scmp.lt.s32.totalorder %s4318_s14, 3  ;;  %s4320_s22 = smov [#allocation6]  }
  0x11   : > { %s4980_s19 = scalar_select %p4421_p4, 1, 0 }
  0x12   : > { %s4981_s20 = scalar_select %p4426_p6, 1, 0 }
  0x13   : > { %p4431_p8 = pnand %p3510_p5, %p277_p7  ;;  %s302_s23 = sshll.u32 %s4320_s22, 4  ;;  %s303_s23 = int_to_ptr.vmem [resolvable:$true] %s302_s23 }
  0x14   : > { %4982 = sst [smem:[#allocation13_spill]] %s4981_s20  ;;  %s38_s25 = sadd.s32 1, %s4314_s13 }
  0x15   : > { %s4983_s21 = scalar_select %p4431_p8, 1, 0 }
  0x16   : > { %p4087_p10 = pneg %p4431_p8  ;;  %p4446_p12 = scmp.ge.s32.totalorder %s38_s25, 2 }
  0x17   : > { %s4986_s6 = sld [smem:[#allocation14_spill]] }
  0x18   : > { %p4440_p11 = pnand %p4087_p10, %p4411_p1 }
  0x19   : > { %s4985_s27 = scalar_select %p4446_p12, 1, 0 }
  0x1a   : > { %p4176_p0 = pneg %p4440_p11 }
  0x1d   : > { %s4174_s15 = scalar_lea.hbm %s4986_s6, 64 }
  0x1e   : > { %p4175_p13 = scmp.ne.s32.totalorder %s4986_s6, %s4174_s15  ;;  %p4181_p7 = scmp.lt.u32.totalorder %s4174_s15, %s4986_s6 }
  0x20   : > { %p4177_p3 = pnand %p4176_p0, %p4175_p13 }
  0x22   : > { %p4178_p5 = pneg %p4177_p3 }
  0x24   : > { %p4183_p10 = pnand %p4181_p7, %p4178_p5 }
  0x26   : > { %4186 = shalt.err (!%p4183_p10)
}
  0x27   : > { %s4187_s26 = scalar_lea.vmem %s303_s23, 64  ;;  %p4195_p4 = scmp.lt.s32.totalorder %s303_s23, %s303_s23 }
  0x28   : > { %p4188_p9 = scmp.ne.s32.totalorder %s303_s23, %s4187_s26  ;;  %p4196_p8 = scmp.lt.s32.totalorder %s4187_s26, %s4187_s26 }
  0x2a   : > { %p4190_p6 = pnand %p4188_p9, %p4176_p0  ;;  %p4197_p2 = por %p4196_p8, %p4195_p4 }
  0x2c   : > { %p4191_p1 = pneg %p4190_p6 }
  0x2e   : > { %p4198_p12 = pnand %p4197_p2, %p4191_p1 }
  0x30   : > { %4201 = shalt.err (!%p4198_p12)
}
  0x31   : > { %4090 = dma.hbm_to_vmem [thread:$0]  (!%p4440_p11), %s4986_s6, 64, %s303_s23, [#allocation7]  }
  0x32   : > { %p4987_p4 = scmp.ne.s32.totalorder %s4985_s27, 0  ;;  %p80_p1 = scmp.ne.s32.totalorder %s4306_s11, %s4302_s10 }
  0x33   : > { %p81_p2 = scmp.eq.s32.totalorder %s4318_s14, 0  ;;  %p4100_p6 = scmp.lt.s32.totalorder %s4318_s14, 2 }
  0x34   : > { %s5005_s25 = smov (%p4987_p4, %s38_s25), 0  ;;  %p4988_p12 = scmp.ne.s32.totalorder %s4979_s18, 0 }
  0x35   : > { %s68_s30 = ssub.s32 %s4314_s13, %s5005_s25  ;;  %p82_p9 = por %p81_p2, %p80_p1 }
  0x36   : > { %p71_p8 = scmp.eq.s32.totalorder %s68_s30, 0  ;;  %p4478_p13 = por %p4988_p12, %p80_p1 }
  0x37   : > { %s333_s24 = sand.u32 1, %s4306_s11   ;;  %s4990_s26 = sadd.s32 1, %s4306_s11 }
  0x38   : > { %s4486_s15 = scalar_select %p71_p8, %s4306_s11, %s4990_s26  }
  0x39   : > { %s3514_s23 = sshll.u32 %s333_s24, 4  ;;  %s3532_s27 = sshll.u32 %s4314_s13, 8 }
  0x3a   : > { %s4492_s28 = scalar_lea.hbm %s4961_s1, %s3532_s27  ;;  %s337_s18 = scalar_lea.vmem [#allocation3], %s3514_s23 }
  0x3b   : > { %s347_s29 = sshll.u32 %s337_s18, 4  ;;  %p4496_p11 = pnand %p4100_p6, %p82_p9  ;;  %s4494_s29 = int_to_ptr.vmem [resolvable:$true] %s347_s29 }
  0x3c   : > { %s334_s26 = scalar_lea.sflag [#allocation4], %s333_s24  ;;  %s4202_s6 = scalar_lea.hbm %s4492_s28, 256 }
  0x3d   : > { %p4203_p0 = scmp.ne.s32.totalorder %s4492_s28, %s4202_s6  ;;  %p4204_p3 = pneg %p4496_p11 }
  0x3e   : > { %s4207_s16 = scalar_lea.hbm %s4961_s1, 512  ;;  %p4208_p10 = scmp.lt.u32.totalorder %s4492_s28, %s4961_s1 }
  0x3f   : > { %p4205_p5 = pnand %p4204_p3, %p4203_p0  ;;  %p4209_p4 = scmp.lt.u32.totalorder %s4207_s16, %s4202_s6 }
  0x40   : > { %p4211_p2 = scmp.lt.u32.totalorder %s4202_s6, %s4492_s28 }
  0x41   : > { %p4206_p7 = pneg %p4205_p5  ;;  %p4210_p1 = por %p4209_p4, %p4208_p10 }
  0x43   : > { %p4212_p6 = por %p4211_p2, %p4210_p1 }
  0x45   : > { %p4213_p8 = pnand %p4212_p6, %p4206_p7 }
  0x47   : > { %4216 = shalt.err (!%p4213_p8)
}
  0x48   : > { %s4217_s24 = scalar_lea.vmem %s4494_s29, 256  ;;  %s4321_s27 = smov [#allocation3]  }
  0x49   : > { %p4218_p9 = scmp.ne.s32.totalorder %s4494_s29, %s4217_s24  ;;  %s4222_s23 = sshll.u32 %s4321_s27, 4  ;;  %s4223_s23 = int_to_ptr.vmem [resolvable:$false] %s4222_s23 }
  0x4a   : > { %s4224_s22 = scalar_lea.vmem %s4223_s23, 512  ;;  %p4225_p5 = scmp.lt.s32.totalorder %s4494_s29, %s4223_s23 }
  0x4b   : > { %p4220_p12 = pnand %p4218_p9, %p4204_p3  ;;  %p4226_p10 = scmp.lt.s32.totalorder %s4224_s22, %s4217_s24 }
  0x4d   : > { %p4221_p0 = pneg %p4220_p12  ;;  %p4227_p4 = por %p4226_p10, %p4225_p5 }
  0x4f   : > { %p4228_p1 = pnand %p4227_p4, %p4221_p0 }
  0x51   : > { %4231 = shalt.err (!%p4228_p1)
}
  0x52   : > { %4094 = dma.hbm_to_vmem [thread:$0]  (!%p4496_p11), %s4492_s28, 256, %s4494_s29, %s334_s26  }
  0x53   : > { %p4992_p7 = scmp.ne.s32.totalorder %s4983_s21, 0 }
  0x54   : > { %s4528_s6 = sand.u32 (!%p4992_p7), 1, %s4302_s10   ;;  %p4993_p3 = scmp.ne.s32.totalorder (!%p4992_p7), %s4980_s19, 0 }
  0x55   : > { %356 = sbr.rel (%p4992_p7) target bundleno = 1235 (0x4d3), region = 56  ;;  %s3518_s16 = sshll.u32 (!%p4992_p7), %s4528_s6, 4 }
  0x56   : > { %s359_s18 = scalar_lea.sflag (!%p4992_p7), [#allocation4], %s4528_s6  ;;  %s4532_s24 = scalar_lea.vmem (!%p4992_p7), [#allocation3], %s3518_s16 }
  0x5c   : > { %4285 = dma.done.wait (%p4993_p3), %s359_s18, 256  }
  0x5d   : > { %4287 = vsyncadd (%p4993_p3), %s359_s18, 4294967040  ;;  %p4994_p11 = scmp.ne.s32.totalorder %s4978_s17, 0 }
  0x5f   : > { %4289 = dma.done.wait (%p4994_p11), [#allocation7], 64  }
  0x60   : > { %4291 = vsyncadd (%p4994_p11), [#allocation7], 4294967232  ;;  %p411_p2 = scmp.lt.s32.totalorder %s4310_s12, 1  ;;  %vm1063_vm0 = vcmask 523264   ;;  %vm458_vm1 = vcmask 130048   ;;  %v430_v2 = vld [vmem:[%s4962_s2] sm:$0xff] }
  0x61   : > { %v431_v6 = vld [vmem:[%s4962_s2 + $0x8] sm:$0xff]  ;;  %v432_v7 = vld [vmem:[%s4962_s2 + $0x10] sm:$0xff]  ;;  %v460_v9 = vsel %vm458_vm1, %v430_v2, 0  ;;  %v433_v12 = vld [vmem:[%s4962_s2 + $0x18] sm:$0xff]  ;;  %v4322_v54 = vmov 0   ;;  %vm4324_vm2 = vmmov 0  }
  0x62   : > { %s412_s21 = scalar_select %p411_p2, %s4310_s12, 1  ;;  %v463_v10 = vsel %vm458_vm1, %v431_v6, 0  ;;  %v466_v11 = vsel %vm458_vm1, %v432_v7, 0  ;;  %v4566_v16 = vand.u32 4294901760, %v460_v9  ;;  %v469_v19 = vsel %vm458_vm1, %v433_v12, 0  ;;  %v1073_v46 = vld [vmem:[%s4964_s4] sm:$0xff]  ;;  %4156 = vset.pattern.permute.xlu1 %v4322_v54  ;;  %4157 = vset.pattern.permute.xlu0 %v4322_v54 }
  0x63   : > { %v4568_v17 = vand.u32 4294901760, %v463_v10  ;;  %v4570_v18 = vand.u32 4294901760, %v466_v11  ;;  %v4575_v21 = vand.u32 4294901760, %v469_v19  ;;  %v1078_v47 = vsel %vm458_vm1, %v1073_v46, 0  ;;  %v434_v53 = vld [vmem:[%s4963_s3] sm:$0xff]  ;;  %v436_v55 = vld [vmem:[%s4963_s3 + $0x10] sm:$0xff] }
  0x64   : > { %s3533_s28 = sshll.u32 %s412_s21, 4  ;;  %v539_v20 = vsub.f32 %v460_v9, %v4566_v16  ;;  %v4591_v48 = vand.u32 4294901760, %v1078_v47  ;;  %440 = vperm.xlu1 %4156, %v434_v53   ;;  %v435_v56 = vld [vmem:[%s4963_s3 + $0x8] sm:$0xff]  ;;  %v437_v57 = vld [vmem:[%s4963_s3 + $0x18] sm:$0xff]  ;;  %v1075_v59 = vld [vmem:[%s4964_s4 + $0x10] sm:$0xff]  ;;  %vm2237_vm3 = vcmask 64512  }
  0x65   : > { %s415_s26 = scalar_lea.vmem %s4960_s0, %s3533_s28  ;;  %v549_v24 = vsub.f32 %v463_v10, %v4568_v17  ;;  %v559_v25 = vsub.f32 %v466_v11, %v4570_v18  ;;  %v569_v27 = vsub.f32 %v469_v19, %v4575_v21  ;;  %v1074_v58 = vld [vmem:[%s4964_s4 + $0x8] sm:$0xff]  ;;  %v1084_v61 = vsel %vm458_vm1, %v1075_v59, 0  ;;  %v1076_v62 = vld [vmem:[%s4964_s4 + $0x18] sm:$0xff]  ;;  %s3520_s29 = sshll.u32 %s4528_s6, 3 }
  0x66   : > { %v428_v0 = vld [vmem:[%s415_s26] sm:$0xff]  ;;  %v429_v1 = vld [vmem:[%s415_s26 + $0x8] sm:$0xff]  ;;  %v540_v26 = vand.u32 4294901760, %v539_v20  ;;  %3711 = vmatprep.mubr.f32.mxu1 %v4591_v48  ;;  %v4605_v49 = vsub.f32 %v1078_v47, %v4591_v48  ;;  %v1081_v60 = vsel %vm458_vm1, %v1074_v58, 0  ;;  %v1176_v2 = vand.u32 4294901760, %v1084_v61  ;;  %s3534_s30 = sshll.u32 %s4310_s12, 7 }
  0x67   : > { %v1064_v3 = vsel %vm1063_vm0, %v428_v0, 0.0  ;;  %v472_v4 = vand.u32 4294901760, %v428_v0  ;;  %v475_v5 = vand.u32 4294901760, %v429_v1  ;;  %v1067_v8 = vsel %vm1063_vm0, %v429_v1, 0.0  ;;  %s410_s26 = scalar_lea.vmem [#allocation8], %s3520_s29  ;;  %s4911_s17 = scalar_lea.hbm %s4969_s9, %s3534_s30 }
  0x68   : > { %1065 = vadd.xlane.f32.xlu0 %v1064_v3  ;;  %v550_v30 = vand.u32 4294901760, %v549_v24  ;;  %v560_v31 = vand.u32 4294901760, %v559_v25  ;;  %v541_v32 = vsub.f32 %v539_v20, %v540_v26  ;;  %v570_v33 = vand.u32 4294901760, %v569_v27  ;;  %445 = vperm.xlu1 %4156, %v435_v56   ;;  %s3387_s19 = sshll.u32 %s410_s26, 4  ;;  %s3371_s23 = scalar_lea.sflag [#allocation5], %s4528_s6  ;;  %s4913_s19 = int_to_ptr.vmem [resolvable:$true] %s3387_s19 }
  0x69   : > { %v580_v13 = vsub.f32 %v428_v0, %v472_v4  ;;  %v587_v14 = vsub.f32 %v429_v1, %v475_v5  ;;  %v4564_v15 = vpack.c.bf16 %v475_v5, %v472_v4  ;;  %v1158_v50 = vand.u32 4294901760, %v4605_v49  ;;  %s4232_s22 = scalar_lea.vmem %s4913_s19, 128  ;;  %s4326_s12 = smov [#allocation8]  }
  0x6a   : > { %v551_v36 = vsub.f32 %v549_v24, %v550_v30  ;;  %v561_v37 = vsub.f32 %v559_v25, %v560_v31  ;;  %v542_v38 = vand.u32 4294901760, %v541_v32  ;;  %v571_v39 = vsub.f32 %v569_v27, %v570_v33  ;;  %p4233_p6 = scmp.ne.s32.totalorder %s4913_s19, %s4232_s22  ;;  %s4236_s16 = sshll.u32 %s4326_s12, 4  ;;  %s4237_s16 = int_to_ptr.vmem [resolvable:$false] %s4236_s16 }
  0x6b   : > { %3824 = vmatprep.subr.bf16.mxu0 %v4564_v15  ;;  %v581_v22 = vand.u32 4294901760, %v580_v13  ;;  %v588_v23 = vand.u32 4294901760, %v587_v14  ;;  %v3831_v43 = vpack.c.bf16 %v587_v14, %v580_v13  ;;  %v1159_v51 = vsub.f32 %v4605_v49, %v1158_v50  ;;  %s4238_s18 = scalar_lea.vmem %s4237_s16, 256  ;;  %p4239_p12 = scmp.lt.s32.totalorder %s4913_s19, %s4237_s16 }
  0x6c   : > { %1068 = vadd.xlane.f32.xlu0 %v1067_v8  ;;  %3826 = vmatpush3.bf16.msra.mxu0 %v4564_v15  ;;  %v552_v41 = vand.u32 4294901760, %v551_v36  ;;  %v562_v42 = vand.u32 4294901760, %v561_v37  ;;  %v572_v44 = vand.u32 4294901760, %v571_v39  ;;  %v1166_v1 = vand.u32 4294901760, %v1081_v60  ;;  %p4234_p8 = pnand %p4233_p6, %p4478_p13  ;;  %p4240_p0 = scmp.lt.s32.totalorder %s4238_s18, %s4232_s22 }
  0x6d   : > { %v582_v28 = vsub.f32 %v580_v13, %v581_v22  ;;  %v589_v29 = vsub.f32 %v587_v14, %v588_v23  ;;  %3641 = vmatprep.mubr.f32.mxu0 %v542_v38  ;;  %v3839_v45 = vpack.c.bf16 %v588_v23, %v581_v22  ;;  %v1160_v52 = vand.u32 4294901760, %v1159_v51  ;;  %455 = vperm.xlu1 %4156, %v437_v57  }
  0x6e   : > { %v1087_v3 = vsel %vm458_vm1, %v1076_v62, 0  ;;  %v1167_v5 = vsub.f32 %v1081_v60, %v1166_v1  ;;  %v1177_v7 = vsub.f32 %v1084_v61, %v1176_v2  ;;  %vm1726_vm4 = vcmask 261120   ;;  %p4235_p9 = pneg %p4234_p8  ;;  %p4241_p5 = por %p4240_p0, %p4239_p12 }
  0x6f   : > { %v583_v34 = vand.u32 4294901760, %v582_v28  ;;  %v590_v35 = vand.u32 4294901760, %v589_v29  ;;  %3642 = vmatmul.mubr.f32.vlgmr.msra.gmra.mrb[0].mxu0 %v552_v41  ;;  %v1186_v10 = vand.u32 4294901760, %v1087_v3  ;;  %vm2215_vm5 = vcmask 519168  }
  0x70   : > { %3644 = vmatprep.mubr.f32.mxu0 %v562_v42  ;;  %v1168_v11 = vand.u32 4294901760, %v1167_v5  ;;  %v1178_v12 = vand.u32 4294901760, %v1177_v7  ;;  %p4242_p10 = pnand %p4241_p5, %p4235_p9 }
  0x71   : > { %v3827_v40 = vpack.c.bf16 %v590_v35, %v583_v34 }
  0x73   : > { %3828 = vmatprep.subr.bf16.mxu0 %v3827_v40  ;;  %3645 = vmatmul.mubr.f32.gmra.mrb[2].mxu0 %v572_v44 }
  0x74   : > { %3830 = vmatpush3.bf16.msra.mxu0 %v3827_v40  ;;  %3651 = vmatprep.mubr.f32.mxu0 %v4566_v16 }
  0x75   : > { %3832 = vmatprep.subr.bf16.mxu0 %v3831_v43 }
  0x77   : > { %3652 = vmatmul.mubr.f32.vlgmr.msra.gmra.mrb[0].mxu0 %v4568_v17 }
  0x78   : > { %3654 = vmatprep.mubr.f32.mxu0 %v4570_v18  ;;  %3834 = vmatpush3.bf16.msra.mxu0 %v3831_v43 }
  0x79   : > { %3836 = vmatprep.subr.bf16.mxu0 %v4564_v15 }
  0x7b   : > { %3655 = vmatmul.mubr.f32.gmra.mrb[2].mxu0 %v4575_v21 }
  0x7c   : > { %3661 = vmatprep.mubr.f32.mxu0 %v539_v20 }
  0x7f   : > { %3662 = vmatmul.mubr.f32.vlgmr.msra.gmra.mrb[0].mxu0 %v549_v24 }
  0x80   : > { %3664 = vmatprep.mubr.f32.mxu0 %v559_v25  ;;  %3838 = vmatpush3.bf16.msra.mxu0 %v4564_v15 }
  0x81   : > { %3840 = vmatprep.subr.bf16.mxu0 %v3839_v45 }
  0x82   : > { %450 = vperm.xlu0 %4157, %v436_v55  }
  0x83   : > { %3665 = vmatmul.mubr.f32.gmra.mrb[2].mxu0 %v569_v27 }
  0x84   : > { %3671 = vmatprep.mubr.f32.mxu0 %v540_v26 }
  0x87   : > { %3672 = vmatmul.mubr.f32.vlgmr.msra.gmra.mrb[0].mxu0 %v550_v30 }
  0x88   : > { %3674 = vmatprep.mubr.f32.mxu0 %v560_v31  ;;  %3842 = vmatpush3.bf16.msra.mxu0 %v3839_v45 }
  0x89   : > { %3844 = vmatprep.subr.bf16.mxu0 %v4564_v15 }
  0x8b   : > { %3675 = vmatmul.mubr.f32.gmra.mrb[2].mxu0 %v570_v33 }
  0x8c   : > { %3681 = vmatprep.mubr.f32.mxu0 %v4566_v16 }
  0x8f   : > { %3682 = vmatmul.mubr.f32.vlgmr.msra.gmra.mrb[0].mxu0 %v4568_v17 }
  0x90   : > { %3684 = vmatprep.mubr.f32.mxu0 %v4570_v18  ;;  %3846 = vmatpush3.bf16.msra.mxu0 %v4564_v15  ;;  %v1187_v15 = vsub.f32 %v1087_v3, %v1186_v10  ;;  %v4325_v3 = vmov 0.0  }
  0x92   : > { %v1188_v20 = vand.u32 4294901760, %v1187_v15 }
  0x93   : > { %3685 = vmatmul.mubr.f32.gmra.mrb[2].mxu0 %v4575_v21 }
  0x94   : > { %3691 = vmatprep.mubr.f32.mxu0 %v4566_v16  ;;  %v1169_v16 = vsub.f32 %v1167_v5, %v1168_v11  ;;  %v1189_v24 = vsub.f32 %v1187_v15, %v1188_v20 }
  0x96   : > { %v1170_v23 = vand.u32 4294901760, %v1169_v16  ;;  %v1190_v29 = vand.u32 4294901760, %v1189_v24  ;;  %v4668_v24 = vld [vmem:[%s4968_s8 + $0x18] sm:$0xff] }
  0x97   : > { %3692 = vmatmul.mubr.f32.vlgmr.msra.gmra.mrb[0].mxu0 %v4568_v17  ;;  %v1179_v17 = vsub.f32 %v1177_v7, %v1178_v12 }
  0x98   : > { %3694 = vmatprep.mubr.f32.mxu0 %v4570_v18 }
  0x99   : > { %v1180_v25 = vand.u32 4294901760, %v1179_v17 }
  0x9b   : > { %3695 = vmatmul.mubr.f32.gmra.mrb[2].mxu0 %v4575_v21 }
  0x9c   : > { %3701 = vmatprep.mubr.f32.mxu0 %v1160_v52 }
  0xf5   : > { %v1066_v63 = vpop.xlane.xlu0 %1065 }
  0xf6   : > { %v1071_v0 = vmul.f32 0.015625, %v1066_v63 }
  0xf8   : > { %v1090_v4 = vand.u32 4294901760, %v1071_v0 }
  0xf9   : > { %v1069_v6 = vpop.xlane.xlu0 %1068 }
  0xfa   : > { %v1198_v8 = vsub.f32 %v1071_v0, %v1090_v4  ;;  %v1072_v9 = vmul.f32 0.015625, %v1069_v6  ;;  %v4323_v0 = vmov 0.0|0.0   ;;  %v2234_v6 = vld [vmem:[#allocation6] sm:$0xf] }
  0xfc   : > { %v1093_v13 = vand.u32 4294901760, %v1072_v9  ;;  %v1199_v14 = vand.u32 4294901760, %v1198_v8 }
  0xfe   : > { %v3847_v18 = vpack.c.bf16 %v1093_v13, %v1090_v4  ;;  %v1205_v19 = vsub.f32 %v1072_v9, %v1093_v13  ;;  %v1200_v21 = vsub.f32 %v1198_v8, %v1199_v14  ;;  %v2236_v4 = vld [vmem:[%s4532_s24 + $0x8] sm:$0xff]  ;;  %v2239_v9 = vsel %vm2237_vm3, %v2234_v6, 0 }
 0x100   : > { %3848 = vmatprep.subr.bf16.mxu0 %v3847_v18  ;;  %v1206_v22 = vand.u32 4294901760, %v1205_v19  ;;  %v1201_v27 = vand.u32 4294901760, %v1200_v21  ;;  %v3855_v31 = vpack.c.bf16 %v1205_v19, %v1198_v8 }
 0x101   : > { %3850 = vmatpush3.bf16.msra.mxu0 %v3847_v18 }
 0x102   : > { %v1207_v26 = vsub.f32 %v1205_v19, %v1206_v22  ;;  %v3863_v32 = vpack.c.bf16 %v1206_v22, %v1199_v14  ;;  %3871 = vmatprep.subr.bf16.mxu0 %v4323_v0 }
 0x104   : > { %v1208_v28 = vand.u32 4294901760, %v1207_v26  ;;  %3702 = vmatmul.mubr.f32.vlgmr.msra.gmra.mrb[4].mxu0 %v1170_v23  ;;  %v4663_v23 = vld [vmem:[%s4968_s8 + $0x8] sm:$0xff]  ;;  %v2714_v26 = vand.u32 4294901760, %v4668_v24 }
 0x105   : > { %3704 = vmatprep.mubr.f32.mxu0 %v1180_v25  ;;  %v2710_v25 = vand.u32 4294901760, %v4663_v23 }
 0x106   : > { %v3851_v30 = vpack.c.bf16 %v1208_v28, %v1201_v27  ;;  %v4681_v28 = vsub.f32 %v4668_v24, %v2714_v26 }
 0x107   : > { %v4676_v27 = vsub.f32 %v4663_v23, %v2710_v25  ;;  %v2230_v23 = vld [vmem:[%s4968_s8 + $0x60] sm:$0xff] }
 0x108   : > { %3852 = vmatprep.subr.bf16.mxu1 %v3851_v30  ;;  %3705 = vmatmul.mubr.f32.gmra.mrb[6].mxu0 %v1190_v29  ;;  %v4686_v29 = vld [vmem:[%s4968_s8] sm:$0xff] }
 0x109   : > { %3854 = vmatpush3.bf16.msra.mxu1 %v3851_v30  ;;  %3765 = vmatprep.mubr.msk.f32.mxu0 %vm4324_vm2, %v4325_v3  ;;  %v4691_v30 = vld [vmem:[%s4968_s8 + $0x10] sm:$0xff] }
 0x10a   : > { %3856 = vmatprep.subr.bf16.mxu1 %v3855_v31 }
 0x10c   : > { %3712 = vmatmul.mubr.f32.vlgmr.msra.gmra.mrb[0].mxu1 %v1166_v1 }
 0x10d   : > { %3858 = vmatpush3.bf16.msra.mxu1 %v3855_v31  ;;  %3714 = vmatprep.mubr.f32.mxu1 %v1176_v2  ;;  %v2712_v31 = vand.u32 4294901760, %v4686_v29 }
 0x10e   : > { %3860 = vmatprep.subr.bf16.mxu1 %v3847_v18 }
 0x110   : > { %3715 = vmatmul.mubr.f32.gmra.mrb[2].mxu1 %v1186_v10 }
 0x111   : > { %3721 = vmatprep.mubr.f32.mxu1 %v4605_v49 }
 0x114   : > { %3722 = vmatmul.mubr.f32.vlgmr.msra.gmra.mrb[0].mxu1 %v1167_v5  ;;  %v2235_v5 = vld [vmem:[%s4532_s24] sm:$0xff] }
 0x115   : > { %3862 = vmatpush3.bf16.msra.mxu1 %v3847_v18  ;;  %3724 = vmatprep.mubr.f32.mxu1 %v1177_v7  ;;  %v2241_v7 = vand.u32 4294901760, %v2236_v4  ;;  %v2243_v8 = vand.u32 4294901760, %v2235_v5 }
 0x116   : > { %3864 = vmatprep.subr.bf16.mxu1 %v3863_v32 }
 0x118   : > { %3725 = vmatmul.mubr.f32.gmra.mrb[2].mxu1 %v1187_v15 }
 0x119   : > { %3731 = vmatprep.mubr.f32.mxu1 %v1158_v50 }
 0x11c   : > { %3732 = vmatmul.mubr.f32.vlgmr.msra.gmra.mrb[0].mxu1 %v1168_v11  ;;  %v2326_v11 = vsub.f32 %v2235_v5, %v2243_v8 }
 0x11d   : > { %3866 = vmatpush3.bf16.msra.mxu1 %v3863_v32  ;;  %3734 = vmatprep.mubr.f32.mxu1 %v1178_v12  ;;  %v2320_v12 = vsub.f32 %v2236_v4, %v2241_v7  ;;  %v2716_v32 = vand.u32 4294901760, %v4691_v30 }
 0x11e   : > { %3868 = vmatprep.subr.bf16.mxu1 %v3847_v18  ;;  %v2327_v15 = vand.u32 4294901760, %v2326_v11 }
 0x11f   : > { %v2321_v14 = vand.u32 4294901760, %v2320_v12 }
 0x120   : > { %3735 = vmatmul.mubr.f32.gmra.mrb[2].mxu1 %v1188_v20 }
 0x121   : > { %3741 = vmatprep.mubr.f32.mxu1 %v4591_v48  ;;  %v2322_v17 = vsub.f32 %v2320_v12, %v2321_v14 }
 0x123   : > { %v2323_v20 = vand.u32 4294901760, %v2322_v17 }
 0x124   : > { %3742 = vmatmul.mubr.f32.vlgmr.msra.gmra.mrb[0].mxu1 %v1166_v1 }
 0x125   : > { %3870 = vmatpush3.bf16.msra.mxu1 %v3847_v18  ;;  %3744 = vmatprep.mubr.f32.mxu1 %v1176_v2  ;;  %v2328_v18 = vsub.f32 %v2326_v11, %v2327_v15 }
 0x126   : > { %2242 = vmatprep.subr.mxu1 %v2241_v7 }
 0x127   : > { %v2329_v21 = vand.u32 4294901760, %v2328_v18 }
 0x128   : > { %3745 = vmatmul.mubr.f32.gmra.mrb[2].mxu1 %v1186_v10 }
 0x129   : > { %3751 = vmatprep.mubr.f32.mxu1 %v4591_v48 }
 0x12c   : > { %3752 = vmatmul.mubr.f32.vlgmr.msra.gmra.mrb[0].mxu1 %v1166_v1 }
 0x12d   : > { %3754 = vmatprep.mubr.f32.mxu1 %v1176_v2  ;;  %v3357_v2 = vld [vmem:[%s4967_s7] sm:$0xf]  ;;  %2244 = vmatpush1.msra.mxu1 %v2243_v8 }
 0x12e   : > { %2324 = vmatprep.subr.mxu1 %v2323_v20 }
 0x130   : > { %3755 = vmatmul.mubr.f32.gmra.mrb[2].mxu1 %v1186_v10  ;;  %v2308_v10 = vand.u32 4294901760, %v2239_v9 }
 0x131   : > { %2307 = vmatprep.mubr.f32.mxu1 %v4325_v3 }
 0x132   : > { %v2309_v13 = vsub.f32 %v2239_v9, %v2308_v10 }
 0x134   : > { %v2310_v16 = vand.u32 4294901760, %v2309_v13 }
 0x136   : > { %v2311_v19 = vsub.f32 %v2309_v13, %v2310_v16 }
 0x138   : > { %v2312_v22 = vand.u32 4294901760, %v2311_v19 }
 0x13a   : > { %2313 = vmatmul.mubr.f32.vlgmr.msra.gmra.mrb[4].mxu1 %v2312_v22 }
 0x13b   : > { %2330 = vmatpush1.msra.mxu1 %v2329_v21  ;;  %2393 = vmatprep.mubr.f32.mxu1 %v4325_v3 }
 0x13c   : > { %2403 = vmatprep.subr.mxu1 %v2320_v12 }
 0x142   : > { %2395 = vmatmul.mubr.f32.vlgmr.msra.gmra.mrb[4].mxu1 %v2308_v10 }
 0x143   : > { %2406 = vmatpush1.msra.mxu1 %v2326_v11  ;;  %2469 = vmatprep.mubr.f32.mxu1 %v4325_v3 }
 0x144   : > { %2479 = vmatprep.subr.mxu1 %v2241_v7 }
 0x14a   : > { %2472 = vmatmul.mubr.f32.vlgmr.msra.gmra.mrb[4].mxu1 %v2309_v13 }
 0x14b   : > { %2481 = vmatpush1.msra.mxu1 %v2243_v8  ;;  %2544 = vmatprep.mubr.f32.mxu1 %v4325_v3 }
 0x14c   : > { %2557 = vmatprep.subr.mxu1 %v2321_v14 }
 0x152   : > { %2548 = vmatmul.mubr.f32.vlgmr.msra.gmra.mrb[4].mxu1 %v2310_v16 }
 0x153   : > { %2561 = vmatpush1.msra.mxu1 %v2327_v15  ;;  %2624 = vmatprep.mubr.f32.mxu1 %v4325_v3 }
 0x154   : > { %2633 = vmatprep.subr.mxu1 %v2241_v7 }
 0x15a   : > { %2626 = vmatmul.mubr.f32.vlgmr.msra.gmra.mrb[4].mxu1 %v2308_v10 }
 0x15b   : > { %2635 = vmatpush1.msra.mxu1 %v2243_v8  ;;  %2698 = vmatprep.mubr.f32.mxu1 %v4325_v3 }
 0x162   : > { %2700 = vmatmul.mubr.f32.vlgmr.msra.gmra.mrb[4].mxu1 %v2308_v10 }
 0x163   : > { %3050 = vmatprep.mubr.f32.mxu1 %v4325_v3 }
 0x16a   : > { %v4640_v33 = vpop.f32.mrb[0].mxu0 }
 0x16b   : > { %v4642_v34 = vpop.f32.mrb[1].mxu0 }
 0x16e   : > { %v4644_v35 = vpop.f32.mrb[2].mxu0 }
 0x16f   : > { %v4646_v36 = vpop.f32.mrb[3].mxu0 }
 0x1d7   : > { %v3703_v37 = vpop.f32.mrb[4].mxu0 }
 0x1d8   : > { %v1162_v38 = vpop.f32.mrb[5].mxu0 }
 0x1db   : > { %v3706_v39 = vpop.f32.mrb[6].mxu0 }
 0x1dc   : > { %v1182_v40 = vpop.f32.mrb[7].mxu0 }
 0x1ff   : > { %v3753_v41 = vpop.f32.mrb[0].mxu1 }
 0x200   : > { %v4007_v42 = vadd.f32 %v3753_v41, %v3703_v37  ;;  %v1655_v43 = vpop.f32.mrb[1].mxu1  ;;  %v3939_v37 = vpack.c.bf16 %v4681_v28, %v4676_v27  ;;  %v441_v41 = vpop.permute.xlu1 %440 }
 0x201   : > { %v4008_v44 = vadd.f32 %v1655_v43, %v1162_v38  ;;  %v4701_v38 = vsub.f32 %v4686_v29, %v2712_v31 }
 0x202   : > { %v3524_v45 = vmul.f32 -1.442695, %v4007_v42  ;;  %3940 = vmatprep.subr.bf16.mxu1 %v3939_v37 }
 0x203   : > { %v3523_v46 = vmul.f32 -1.442695, %v4008_v44  ;;  %v3756_v47 = vpop.f32.mrb[2].mxu1 }
 0x204   : > { %4158 = vpow2.f32 %v3524_v45  ;;  %v4009_v48 = vadd.f32 %v3756_v47, %v3706_v39  ;;  %v1667_v49 = vpop.f32.mrb[3].mxu1  ;;  %v4706_v39 = vsub.f32 %v4691_v30, %v2716_v32  ;;  %v446_v42 = vpop.permute.xlu1 %445  ;;  %v1725_v45 = vld [vmem:[%s4965_s5] sm:$0xf]  ;;  %v4004_v47 = vadd.f32 %v4642_v34, %v441_v41  ;;  %v2232_v30 = vld [vmem:[%s4968_s8 + $0x70] sm:$0xff] }
 0x205   : > { %4160 = vpow2.f32 %v3523_v46  ;;  %v4010_v50 = vadd.f32 %v1667_v49, %v1182_v40  ;;  %v4003_v43 = vadd.f32 %v4640_v33, %v446_v42  ;;  %v451_v49 = vpop.permute.xlu0 %450 }
 0x206   : > { %v3526_v52 = vmul.f32 -1.442695, %v4009_v48  ;;  %v3941_v40 = vpack.c.bf16 %v4706_v39, %v4701_v38  ;;  %v1728_v48 = vsel %vm1726_vm4, %v1725_v45, 0 }
 0x207   : > { %v3525_v51 = vmul.f32 -1.442695, %v4010_v50  ;;  %v1060_v46 = vmax.f32 %v4003_v43, 0.0 }
 0x208   : > { %3942 = vmatpush1.bf16.msra.mxu1 %v3941_v40  ;;  %v456_v44 = vpop.permute.xlu1 %455 }
 0x209   : > { %4162 = vpow2.f32 %v3525_v51 }
 0x20a   : > { %4164 = vpow2.f32 %v3526_v52  ;;  %v4716_v52 = vand.u32 4294901760, %v1728_v48 }
 0x20e   : > { %v4159_v53 = vpop.eup %4158 }
 0x20f   : > { %v4161_v54 = vpop.eup %4160  ;;  %v1690_v55 = vadd.f32 1.0, %v4159_v53  ;;  %v1059_v53 = vmax.f32 %v4004_v47, 0.0  ;;  %v2225_v47 = vld [vmem:[%s4968_s8 + $0x38] sm:$0xff] }
 0x210   : > { %v1689_v56 = vadd.f32 1.0, %v4161_v54  ;;  %v4006_v54 = vadd.f32 %v4646_v36, %v451_v49  ;;  %v2722_v49 = vand.u32 4294901760, %v2225_v47 }
 0x211   : > { %4166 = vrcp.f32 %v1690_v55 }
 0x212   : > { %4168 = vrcp.f32 %v1689_v56 }
 0x213   : > { %v4163_v57 = vpop.eup %4162 }
 0x214   : > { %v1691_v58 = vadd.f32 1.0, %v4163_v57  ;;  %v4165_v59 = vpop.eup %4164 }
 0x215   : > { %v1692_v60 = vadd.f32 1.0, %v4165_v59  ;;  %v1800_v59 = vsub.f32 %v1728_v48, %v4716_v52 }
 0x216   : > { %4170 = vrcp.f32 %v1691_v58  ;;  %v4005_v58 = vadd.f32 %v4644_v35, %v456_v44 }
 0x217   : > { %4172 = vrcp.f32 %v1692_v60  ;;  %v1061_v60 = vmax.f32 %v4006_v54, 0.0  ;;  %v1801_v5 = vand.u32 4294901760, %v1800_v59  ;;  %v4760_v54 = vsub.f32 %v2225_v47, %v2722_v49 }
 0x218   : > { %v1062_v4 = vmax.f32 %v4005_v58, 0.0 }
 0x219   : > { %v1802_v13 = vsub.f32 %v1800_v59, %v1801_v5 }
 0x21b   : > { %v4167_v61 = vpop.eup %4166  ;;  %v1803_v21 = vand.u32 4294901760, %v1802_v13 }
 0x21c   : > { %1708 = vperm.xlu1 %4156, %v4167_v61   ;;  %v4169_v62 = vpop.eup %4168 }
 0x220   : > { %1703 = vperm.xlu1 %4156, %v4169_v62   ;;  %v4171_v63 = vpop.eup %4170 }
 0x221   : > { %v4173_v1 = vpop.eup %4172 }
 0x224   : > { %1713 = vperm.xlu1 %4156, %v4171_v63  }
 0x228   : > { %1718 = vperm.xlu1 %4156, %v4173_v1  }
 0x22c   : > { %3360 = vperm.xlu1 %4156, %v3357_v2  }
 0x29b   : > { %v1709_v50 = vpop.permute.xlu1 %1708 }
 0x29c   : > { %v1722_v51 = vmul.f32 %v1709_v50, %v1060_v46  ;;  %v2223_v46 = vld [vmem:[%s4968_s8 + $0x28] sm:$0xff]  ;;  %v2222_v50 = vld [vmem:[%s4968_s8 + $0x20] sm:$0xff] }
 0x29d   : > { %v2718_v48 = vand.u32 4294901760, %v2223_v46 }
 0x29e   : > { %v1734_v55 = vand.u32 4294901760, %v1722_v51 }
 0x29f   : > { %v1704_v33 = vpop.permute.xlu1 %1703  ;;  %v4807_v29 = vpack.c.bf16 %v2722_v49, %v2718_v48 }
 0x2a0   : > { %v1818_v56 = vsub.f32 %v1722_v51, %v1734_v55  ;;  %v1721_v57 = vmul.f32 %v1704_v33, %v1059_v53  ;;  %v2720_v51 = vand.u32 4294901760, %v2222_v50  ;;  %v4758_v53 = vsub.f32 %v2223_v46, %v2718_v48 }
 0x2a2   : > { %v1819_v61 = vand.u32 4294901760, %v1818_v56  ;;  %v1731_v34 = vand.u32 4294901760, %v1721_v57  ;;  %v3943_v58 = vpack.c.bf16 %v4760_v54, %v4758_v53 }
 0x2a3   : > { %v1714_v62 = vpop.permute.xlu1 %1713 }
 0x2a4   : > { %v3872_v63 = vpack.c.bf16 %v1734_v55, %v1731_v34  ;;  %v1811_v1 = vsub.f32 %v1721_v57, %v1731_v34  ;;  %v1723_v2 = vmul.f32 %v1714_v62, %v1061_v60  ;;  %v1820_v6 = vsub.f32 %v1818_v56, %v1819_v61  ;;  %v2229_v57 = vld [vmem:[%s4968_s8 + $0x58] sm:$0xff]  ;;  %v2228_v34 = vld [vmem:[%s4968_s8 + $0x50] sm:$0xff]  ;;  %3944 = vmatprep.subr.bf16.mxu1 %v3943_v58 }
 0x2a5   : > { %v4762_v55 = vsub.f32 %v2222_v50, %v2720_v51  ;;  %v2730_v60 = vand.u32 4294901760, %v2229_v57 }
 0x2a6   : > { %v1812_v7 = vand.u32 4294901760, %v1811_v1  ;;  %v3884_v36 = vpack.c.bf16 %v1818_v56, %v1811_v1  ;;  %v1737_v8 = vand.u32 4294901760, %v1723_v2  ;;  %3873 = vmatpush3.bf16.msra.mxu0 %v3872_v63  ;;  %v1821_v14 = vand.u32 4294901760, %v1820_v6  ;;  %v2227_v56 = vld [vmem:[%s4968_s8 + $0x48] sm:$0xff] }
 0x2a7   : > { %v1719_v9 = vpop.permute.xlu1 %1718  ;;  %3874 = vmatprep.subr.bf16.mxu0 %v4323_v0 }
 0x2a8   : > { %v1813_v35 = vsub.f32 %v1811_v1, %v1812_v7  ;;  %v1825_v10 = vsub.f32 %v1723_v2, %v1737_v8  ;;  %v1724_v11 = vmul.f32 %v1719_v9, %v1062_v4  ;;  %v3896_v12 = vpack.c.bf16 %v1819_v61, %v1812_v7  ;;  %v2226_v61 = vld [vmem:[%s4968_s8 + $0x40] sm:$0xff]  ;;  %v2231_v4 = vld [vmem:[%s4968_s8 + $0x68] sm:$0xff] }
 0x2a9   : > { %v4792_v1 = vpack.c.bf16 %v2716_v32, %v2712_v31  ;;  %v2728_v2 = vand.u32 4294901760, %v2226_v61  ;;  %v2734_v6 = vand.u32 4294901760, %v2231_v4  ;;  %v2736_v9 = vand.u32 4294901760, %v2230_v23 }
 0x2aa   : > { %v1814_v15 = vand.u32 4294901760, %v1813_v35  ;;  %v1826_v16 = vand.u32 4294901760, %v1825_v10  ;;  %v1740_v17 = vand.u32 4294901760, %v1724_v11  ;;  %v2740_v35 = vand.u32 4294901760, %v2232_v30 }
 0x2ab   : > { %v4813_v31 = vsub.f32 %v2226_v61, %v2728_v2 }
 0x2ac   : > { %v3875_v18 = vpack.c.bf16 %v1740_v17, %v1737_v8  ;;  %v1832_v19 = vsub.f32 %v1724_v11, %v1740_v17  ;;  %v3878_v20 = vpack.c.bf16 %v1821_v14, %v1814_v15  ;;  %v1827_v22 = vsub.f32 %v1825_v10, %v1826_v16 }
 0x2ad   : > { %v4831_v14 = vsub.f32 %v2230_v23, %v2736_v9  ;;  %v4833_v15 = vsub.f32 %v2232_v30, %v2740_v35  ;;  %v2858_v58 = vand.u32 4294901760, %v4813_v31 }
 0x2ae   : > { %v1833_v37 = vand.u32 4294901760, %v1832_v19  ;;  %v3887_v40 = vpack.c.bf16 %v1832_v19, %v1825_v10  ;;  %3876 = vmatpush3.bf16.msra.mxu0 %v3875_v18  ;;  %v1828_v43 = vand.u32 4294901760, %v1827_v22  ;;  %v4823_v10 = vsub.f32 %v2231_v4, %v2734_v6 }
 0x2af   : > { %3877 = vmatprep.subr.bf16.mxu0 %v4323_v0  ;;  %v3953_v17 = vpack.c.bf16 %v4833_v15, %v4831_v14  ;;  %v2894_v30 = vand.u32 4294901760, %v4833_v15 }
 0x2b0   : > { %v1834_v41 = vsub.f32 %v1832_v19, %v1833_v37  ;;  %v3899_v42 = vpack.c.bf16 %v1833_v37, %v1826_v16  ;;  %v2804_v19 = vand.u32 4294901760, %v4676_v27 }
 0x2b1   : > { %3766 = vmatmul.mubr.f32.vlgmr.msra.gmra.mrb[8].mxu0 %v1803_v21 }
 0x2b2   : > { %v1835_v44 = vand.u32 4294901760, %v1834_v41  ;;  %3879 = vmatpush3.bf16.msra.mxu0 %v3878_v20  ;;  %3776 = vmatprep.mubr.msk.f32.mxu0 %vm4324_vm2, %v4325_v3  ;;  %v2816_v20 = vand.u32 4294901760, %v4681_v28  ;;  %v2805_v22 = vsub.f32 %v4676_v27, %v2804_v19 }
 0x2b3   : > { %3880 = vmatprep.subr.bf16.mxu0 %v4323_v0 }
 0x2b4   : > { %v3881_v45 = vpack.c.bf16 %v1835_v44, %v1828_v43  ;;  %v2817_v37 = vsub.f32 %v4681_v28, %v2816_v20  ;;  %v2806_v41 = vand.u32 4294901760, %v2805_v22  ;;  %v2828_v43 = vand.u32 4294901760, %v4758_v53 }
 0x2b5   : > { %v2840_v44 = vand.u32 4294901760, %v4760_v54 }
 0x2b6   : > { %3882 = vmatpush3.bf16.msra.mxu0 %v3881_v45  ;;  %v2834_v45 = vand.u32 4294901760, %v4762_v55  ;;  %v2829_v27 = vsub.f32 %v4758_v53, %v2828_v43 }
 0x2b7   : > { %3883 = vmatprep.subr.bf16.mxu0 %v4323_v0  ;;  %v2841_v28 = vsub.f32 %v4760_v54, %v2840_v44 }
 0x2b8   : > { %v2835_v48 = vsub.f32 %v4762_v55, %v2834_v45  ;;  %v2830_v50 = vand.u32 4294901760, %v2829_v27 }
 0x2b9   : > { %3777 = vmatmul.mubr.f32.vlgmr.msra.gmra.mrb[8].mxu0 %v4716_v52 }
 0x2ba   : > { %3885 = vmatpush3.bf16.msra.mxu0 %v3884_v36  ;;  %3787 = vmatprep.mubr.msk.f32.mxu0 %vm4324_vm2, %v4325_v3 }
 0x2bb   : > { %3886 = vmatprep.subr.bf16.mxu0 %v4323_v0 }
 0x2be   : > { %3888 = vmatpush3.bf16.msra.mxu0 %v3887_v40  ;;  %v4851_v40 = vpack.c.bf16 %v2740_v35, %v2736_v9 }
 0x2bf   : > { %3889 = vmatprep.subr.bf16.mxu0 %v4323_v0 }
 0x2c1   : > { %3788 = vmatmul.mubr.f32.vlgmr.msra.gmra.mrb[8].mxu0 %v1800_v59  ;;  %v2726_v59 = vand.u32 4294901760, %v2227_v56 }
 0x2c2   : > { %3891 = vmatpush3.bf16.msra.mxu0 %v3872_v63  ;;  %3798 = vmatprep.mubr.msk.f32.mxu0 %vm4324_vm2, %v4325_v3 }
 0x2c3   : > { %3892 = vmatprep.subr.bf16.mxu0 %v4323_v0  ;;  %v4803_v24 = vsub.f32 %v2227_v56, %v2726_v59  ;;  %v2836_v56 = vand.u32 4294901760, %v2835_v48 }
 0x2c6   : > { %3894 = vmatpush3.bf16.msra.mxu0 %v3875_v18 }
 0x2c7   : > { %3895 = vmatprep.subr.bf16.mxu0 %v4323_v0 }
 0x2c9   : > { %3799 = vmatmul.mubr.f32.vlgmr.msra.gmra.mrb[8].mxu0 %v1801_v5  ;;  %v2233_v5 = vld [vmem:[%s4968_s8 + $0x78] sm:$0xff] }
 0x2ca   : > { %3897 = vmatpush3.bf16.msra.mxu0 %v3896_v12  ;;  %3809 = vmatprep.mubr.msk.f32.mxu0 %vm4324_vm2, %v4325_v3  ;;  %v2738_v7 = vand.u32 4294901760, %v2233_v5  ;;  %v4827_v12 = vpack.c.bf16 %v2730_v60, %v2726_v59 }
 0x2cb   : > { %3898 = vmatprep.subr.bf16.mxu0 %v4323_v0 }
 0x2cc   : > { %v4825_v11 = vsub.f32 %v2233_v5, %v2738_v7  ;;  %v4847_v21 = vpack.c.bf16 %v2738_v7, %v2734_v6 }
 0x2ce   : > { %3900 = vmatpush3.bf16.msra.mxu0 %v3899_v42  ;;  %v3951_v16 = vpack.c.bf16 %v4825_v11, %v4823_v10  ;;  %v2818_v42 = vand.u32 4294901760, %v2817_v37  ;;  %v2888_v4 = vand.u32 4294901760, %v4825_v11  ;;  %v3975_v37 = vpack.c.bf16 %v2840_v44, %v2828_v43 }
 0x2cf   : > { %3901 = vmatprep.subr.bf16.mxu0 %v4323_v0 }
 0x2d0   : > { %v3923_v47 = vpack.c.bf16 %v2818_v42, %v2806_v41  ;;  %v2889_v6 = vsub.f32 %v4825_v11, %v2888_v4 }
 0x2d1   : > { %3810 = vmatmul.mubr.f32.vlgmr.msra.gmra.mrb[8].mxu0 %v4716_v52 }
 0x2d2   : > { %3903 = vmatpush3.bf16.msra.mxu0 %v3872_v63  ;;  %3820 = vmatprep.mubr.msk.f32.mxu0 %vm4324_vm2, %v4325_v3  ;;  %v4786_v63 = vpack.c.bf16 %v2714_v26, %v2710_v25  ;;  %v4805_v25 = vsub.f32 %v2229_v57, %v2730_v60  ;;  %v2732_v26 = vand.u32 4294901760, %v2228_v34  ;;  %v2890_v35 = vand.u32 4294901760, %v2889_v6 }
 0x2d3   : > { %3904 = vmatprep.subr.bf16.mxu0 %v4323_v0  ;;  %v2224_v0 = vld [vmem:[%s4968_s8 + $0x30] sm:$0xff] }
 0x2d4   : > { %v3947_v36 = vpack.c.bf16 %v4805_v25, %v4803_v24  ;;  %v4820_v8 = vsub.f32 %v2228_v34, %v2732_v26 }
 0x2d6   : > { %3906 = vmatpush3.bf16.msra.mxu0 %v3875_v18  ;;  %v3949_v13 = vpack.c.bf16 %v4820_v8, %v4813_v31  ;;  %v4840_v18 = vpack.c.bf16 %v2732_v26, %v2728_v2  ;;  %v2870_v59 = vand.u32 4294901760, %v4820_v8  ;;  %v2876_v2 = vand.u32 4294901760, %v4823_v10 }
 0x2d7   : > { %3908 = vmatprep.subr.bf16.mxu0 %v4786_v63  ;;  %v2882_v26 = vand.u32 4294901760, %v4831_v14 }
 0x2d8   : > { %v2871_v61 = vsub.f32 %v4820_v8, %v2870_v59  ;;  %v3971_v8 = vpack.c.bf16 %v2816_v20, %v2804_v19  ;;  %v3983_v27 = vpack.c.bf16 %v2888_v4, %v2876_v2  ;;  %v2810_v19 = vand.u32 4294901760, %v4701_v38 }
 0x2d9   : > { %3821 = vmatmul.mubr.f32.vlgmr.msra.gmra.mrb[8].mxu0 %v4716_v52  ;;  %v2724_v52 = vand.u32 4294901760, %v2224_v0  ;;  %v2883_v7 = vsub.f32 %v4831_v14, %v2882_v26  ;;  %v2822_v20 = vand.u32 4294901760, %v4706_v39 }
 0x2da   : > { %2790 = vmatprep.mubr.f32.mxu0 %v4325_v3  ;;  %3910 = vmatpush1.bf16.msra.mxu0 %v4792_v1  ;;  %v2872_v23 = vand.u32 4294901760, %v2871_v61  ;;  %v2811_v43 = vsub.f32 %v4701_v38, %v2810_v19 }
 0x2db   : > { %v4764_v33 = vsub.f32 %v2224_v0, %v2724_v52  ;;  %v4815_v32 = vpack.c.bf16 %v2724_v52, %v2720_v51  ;;  %3912 = vmatprep.subr.bf16.mxu0 %v4807_v29  ;;  %v2842_v0 = vand.u32 4294901760, %v2841_v28  ;;  %v2852_v51 = vand.u32 4294901760, %v4803_v24  ;;  %v2701_v28 = vpop.f32.mrb[4].mxu1 }
 0x2dc   : > { %v2864_v52 = vand.u32 4294901760, %v4805_v25  ;;  %v4879_v11 = vpop.f32.mrb[5].mxu1  ;;  %v2823_v44 = vsub.f32 %v4706_v39, %v2822_v20  ;;  %v3973_v38 = vpack.c.bf16 %v2822_v20, %v2810_v19 }
 0x2dd   : > { %v3945_v62 = vpack.c.bf16 %v4764_v33, %v4762_v55  ;;  %v2846_v46 = vand.u32 4294901760, %v4764_v33  ;;  %v3927_v53 = vpack.c.bf16 %v2842_v0, %v2830_v50  ;;  %v2853_v54 = vsub.f32 %v4803_v24, %v2852_v51 }
 0x2de   : > { %3914 = vmatpush1.bf16.msra.mxu0 %v4815_v32  ;;  %v2865_v55 = vsub.f32 %v4805_v25, %v2864_v52  ;;  %v2877_v25 = vsub.f32 %v4823_v10, %v2876_v2  ;;  %v3979_v42 = vpack.c.bf16 %v2864_v52, %v2852_v51  ;;  %v3985_v10 = vpack.c.bf16 %v2894_v30, %v2882_v26 }
 0x2df   : > { %3946 = vmatpush1.bf16.msra.mxu1 %v3945_v62  ;;  %3916 = vmatprep.subr.bf16.mxu0 %v4827_v12  ;;  %v2847_v49 = vsub.f32 %v4764_v33, %v2846_v46  ;;  %v2859_v33 = vsub.f32 %v4813_v31, %v2858_v58  ;;  %v2854_v34 = vand.u32 4294901760, %v2853_v54  ;;  %v3977_v41 = vpack.c.bf16 %v2846_v46, %v2834_v45 }
 0x2e0   : > { %3948 = vmatprep.subr.bf16.mxu1 %v3947_v36  ;;  %v2866_v62 = vand.u32 4294901760, %v2865_v55  ;;  %v2895_v36 = vsub.f32 %v4833_v15, %v2894_v30  ;;  %v2878_v9 = vand.u32 4294901760, %v2877_v25  ;;  %v2812_v50 = vand.u32 4294901760, %v2811_v43 }
 0x2e1   : > { %v2848_v57 = vand.u32 4294901760, %v2847_v49  ;;  %v2860_v5 = vand.u32 4294901760, %v2859_v33  ;;  %v2824_v0 = vand.u32 4294901760, %v2823_v44 }
 0x2e2   : > { %3918 = vmatpush1.bf16.msra.mxu0 %v4840_v18  ;;  %v3931_v24 = vpack.c.bf16 %v2866_v62, %v2854_v34 }
 0x2e3   : > { %3950 = vmatpush1.bf16.msra.mxu1 %v3949_v13  ;;  %3920 = vmatprep.subr.bf16.mxu0 %v4847_v21  ;;  %v3929_v60 = vpack.c.bf16 %v2848_v57, %v2836_v56  ;;  %v3933_v31 = vpack.c.bf16 %v2872_v23, %v2860_v5  ;;  %v2884_v13 = vand.u32 4294901760, %v2883_v7  ;;  %v3925_v56 = vpack.c.bf16 %v2824_v0, %v2812_v50 }
 0x2e4   : > { %3952 = vmatprep.subr.bf16.mxu1 %v3951_v16  ;;  %v2896_v16 = vand.u32 4294901760, %v2895_v36 }
 0x2e6   : > { %3922 = vmatpush1.bf16.msra.mxu0 %v4851_v40  ;;  %v3937_v22 = vpack.c.bf16 %v2896_v16, %v2884_v13 }
 0x2e7   : > { %3954 = vmatpush1.bf16.msra.mxu1 %v3953_v17  ;;  %3924 = vmatprep.subr.bf16.mxu0 %v3923_v47  ;;  %v3935_v17 = vpack.c.bf16 %v2890_v35, %v2878_v9  ;;  %v3981_v47 = vpack.c.bf16 %v2870_v59, %v2858_v58 }
 0x2e8   : > { %3956 = vmatprep.subr.bf16.mxu1 %v4786_v63 }
 0x3ac   : > { %v2211_v14 = vpop.f32.mrb[8].mxu0 }
 0x3ad   : > { %2216 = vst.msk [vmem:[#allocation2] sm:$0xf] %vm2215_vm5, %v2211_v14  ;;  %v3822_v15 = vpop.f32.mrb[9].mxu0 }
 0x3b4   : > { %v2217_v48 = vld [vmem:[#allocation2] sm:$0xf] }
 0x3b5   : > { %v2708_v49 = vsel %vm1063_vm0, %v2217_v48, 0 }
 0x3b6   : > { %v2791_v45 = vand.u32 4294901760, %v2708_v49 }
 0x3b8   : > { %v2792_v46 = vsub.f32 %v2708_v49, %v2791_v45 }
 0x3ba   : > { %3053 = vmatmul.mubr.f32.vlgmr.msra.gmra.mrb[6].mxu1 %v2792_v46  ;;  %v2793_v51 = vand.u32 4294901760, %v2792_v46 }
 0x3bb   : > { %3958 = vmatpush1.bf16.msra.mxu1 %v4792_v1  ;;  %3139 = vmatprep.mubr.f32.mxu1 %v4325_v3 }
 0x3bc   : > { %3960 = vmatprep.subr.bf16.mxu1 %v4807_v29  ;;  %v2794_v52 = vsub.f32 %v2792_v46, %v2793_v51 }
 0x3be   : > { %v2795_v57 = vand.u32 4294901760, %v2794_v52 }
 0x3bf   : > { %3962 = vmatpush1.bf16.msra.mxu1 %v4815_v32 }
 0x3c0   : > { %2796 = vmatmul.mubr.f32.vlgmr.msra.gmra.mrb[10].mxu0 %v2795_v57  ;;  %3964 = vmatprep.subr.bf16.mxu1 %v4827_v12 }
 0x3c1   : > { %3926 = vmatpush1.bf16.msra.mxu0 %v3925_v56  ;;  %2946 = vmatprep.mubr.f32.mxu0 %v4325_v3 }
 0x3c2   : > { %3928 = vmatprep.subr.bf16.mxu0 %v3927_v53 }
 0x3c3   : > { %3966 = vmatpush1.bf16.msra.mxu1 %v4840_v18 }
 0x3c4   : > { %3968 = vmatprep.subr.bf16.mxu1 %v4847_v21 }
 0x3c5   : > { %3930 = vmatpush1.bf16.msra.mxu0 %v3929_v60 }
 0x3c6   : > { %3932 = vmatprep.subr.bf16.mxu0 %v3931_v24 }
 0x3c7   : > { %3970 = vmatpush1.bf16.msra.mxu1 %v4851_v40 }
 0x3c8   : > { %3972 = vmatprep.subr.bf16.mxu1 %v3971_v8 }
 0x3c9   : > { %3934 = vmatpush1.bf16.msra.mxu0 %v3933_v31 }
 0x3ca   : > { %3143 = vmatmul.mubr.f32.vlgmr.msra.gmra.mrb[6].mxu1 %v2793_v51  ;;  %3936 = vmatprep.subr.bf16.mxu0 %v3935_v17 }
 0x3cb   : > { %3974 = vmatpush1.bf16.msra.mxu1 %v3973_v38  ;;  %3261 = vmatprep.mubr.f32.mxu1 %v4325_v3 }
 0x3cc   : > { %3976 = vmatprep.subr.bf16.mxu1 %v3975_v37 }
 0x3cd   : > { %3938 = vmatpush1.bf16.msra.mxu0 %v3937_v22 }
 0x3cf   : > { %3978 = vmatpush1.bf16.msra.mxu1 %v3977_v41 }
 0x3d0   : > { %2948 = vmatmul.mubr.f32.vlgmr.msra.gmra.mrb[10].mxu0 %v2791_v45  ;;  %3980 = vmatprep.subr.bf16.mxu1 %v3979_v42 }
 0x3d3   : > { %3982 = vmatpush1.bf16.msra.mxu1 %v3981_v47 }
 0x3d4   : > { %3984 = vmatprep.subr.bf16.mxu1 %v3983_v27 }
 0x3d7   : > { %3986 = vmatpush1.bf16.msra.mxu1 %v3985_v10 }
 0x3d8   : > { %3988 = vmatprep.subr.bf16.mxu1 %v4786_v63 }
 0x3da   : > { %3263 = vmatmul.mubr.f32.vlgmr.msra.gmra.mrb[6].mxu1 %v2791_v45 }
 0x3db   : > { %3990 = vmatpush1.bf16.msra.mxu1 %v4792_v1  ;;  %3349 = vmatprep.mubr.f32.mxu1 %v4325_v3 }
 0x3dc   : > { %3992 = vmatprep.subr.bf16.mxu1 %v4807_v29 }
 0x3df   : > { %3994 = vmatpush1.bf16.msra.mxu1 %v4815_v32 }
 0x3e0   : > { %3996 = vmatprep.subr.bf16.mxu1 %v4827_v12  ;;  %v3361_v12 = vpop.permute.xlu1 %3360 }
 0x3e3   : > { %3998 = vmatpush1.bf16.msra.mxu1 %v4840_v18 }
 0x3e4   : > { %4000 = vmatprep.subr.bf16.mxu1 %v4847_v21 }
 0x3e7   : > { %4002 = vmatpush1.bf16.msra.mxu1 %v4851_v40 }
 0x3ea   : > { %3351 = vmatmul.mubr.f32.vlgmr.msra.gmra.mrb[6].mxu1 %v2791_v45 }
 0x4a3   : > { %v2949_v39 = vpop.f32.mrb[10].mxu0 }
 0x4a4   : > { %v4011_v63 = vadd.f32 %v2949_v39, %v2701_v28  ;;  %v2951_v58 = vpop.f32.mrb[11].mxu0 }
 0x4a5   : > { %v4013_v1 = vadd.f32 %v2951_v58, %v4879_v11 }
 0x4bd   : > { %v3352_v3 = vpop.f32.mrb[6].mxu1 }
 0x4be   : > { %v4012_v29 = vadd.f32 %v4011_v63, %v3352_v3  ;;  %v3354_v32 = vpop.f32.mrb[7].mxu1 }
 0x4bf   : > { %v4014_v59 = vadd.f32 %v4013_v1, %v3354_v32 }
 0x4c0   : > { %v3363_v53 = vadd.f32 %v4012_v29, %v3361_v12 }
 0x4c1   : > { %v3364_v18 = vadd.f32 %v4014_v59, %v3361_v12 }
 0x4c3   : > { %v3367_v21 = vcombine.low %v3363_v53, %v3364_v18 }
 0x4c5   : > { %3369 = vst [vmem:[%s410_s26] sm:$0xff] %v3367_v21 }
 0x4c6   : > { %4245 = shalt.err (!%p4242_p10)
}
 0x4c7   : > { %s4246_s6 = scalar_lea.hbm %s4911_s17, 128  ;;  %s4250_s29 = scalar_lea.hbm %s4969_s9, 256 }
 0x4c8   : > { %p4247_p4 = scmp.ne.s32.totalorder %s4911_s17, %s4246_s6  ;;  %p4251_p3 = scmp.lt.u32.totalorder %s4911_s17, %s4969_s9 }
 0x4c9   : > { %p4252_p11 = scmp.lt.u32.totalorder %s4250_s29, %s4246_s6  ;;  %p4254_p6 = scmp.lt.u32.totalorder %s4246_s6, %s4911_s17 }
 0x4ca   : > { %p4248_p1 = pnand %p4247_p4, %p4478_p13 }
 0x4cb   : > { %p4253_p2 = por %p4252_p11, %p4251_p3 }
 0x4cc   : > { %p4249_p7 = pneg %p4248_p1 }
 0x4cd   : > { %p4255_p8 = por %p4254_p6, %p4253_p2 }
 0x4cf   : > { %p4256_p9 = pnand %p4255_p8, %p4249_p7 }
 0x4d1   : > { %4259 = shalt.err (!%p4256_p9)
}
 0x4d2   : > { %4085 = dma.vmem_to_hbm [thread:$0]  (%p4478_p13), %s4913_s19, 128, %s4911_s17, %s3371_s23  }
 0x4d3 PF: > { %s4995_s27 = sld [smem:[#allocation12_spill]]  ;;  %s4996_s24 = sld [smem:[#allocation13_spill]] }
 0x4d4   : > { %p4998_p0 = scmp.ge.s32.totalorder %s4318_s14, 2 }
 0x4d9   : > { %s3399_s22 = sand.u32 1, %s4995_s27   ;;  %p4997_p12 = scmp.ne.s32.totalorder %s4996_s24, 0 }
 0x4da   : > { %s3400_s12 = scalar_lea.sflag [#allocation5], %s3399_s22 }
 0x4db   : > { %p4096_p5 = pnand %p4998_p0, %p4997_p12 }
 0x4dd   : > { %4293 = dma.done.wait (!%p4096_p5), %s3400_s12, 128  }
 0x4de   : > { %4295 = vsyncadd (!%p4096_p5), %s3400_s12, 4294967168  ;;  %s26_s14 = sadd.s32 1, %s4318_s14   ;;  %s4999_s30 = smov %s4302_s10 }
 0x4df   : > { %p23_p10 = scmp.ge.s32.totalorder %s26_s14, 4   ;;  %s5000_s10 = smov %s4306_s11 }
 0x4e0   : > { %s5001_s11 = smov %s4486_s15  ;;  %s5002_s12 = smov %s4314_s13 }
 0x4e1   : > { %s5003_s13 = smov %s5005_s25  ;;  %25 = sbr.rel (!%p23_p10) target bundleno = 9 (0x9), region = 115 }
 0x4e8   :  { %3405 = vsyncpa [#allocation4], 1 }
 0x4e9   :  { %3407 = vsyncpa [#allocation4 + $0x1], 1 }
 0x4ea   :  { %3408 = vsyncpa [#allocation7], 1 }
 0x4eb   :  { %3409 = vsyncpa [#allocation5], 1 }
 0x4ec   :  { %3411 = vsyncpa [#allocation5 + $0x1], 1 }

</bundles_post_ra>
